<compile_context>
chip_gen: v5e
topology: v5e:2x2
jax: 0.10.0
libtpu: 0.0.40
codegen_flags: <defaults>
</compile_context>

<pallas_src>
import functools

import numpy as np
import jax
import jax.numpy as jnp
from jax.experimental import pallas as pl
from jax.experimental.pallas import tpu as pltpu

LANES = 128


# ----------------------------------------------------------------------------
# Kernel: one (batch, row-strip) tile per grid step.
#   logit_ref  : (1, C, TR, 128) float   probabilities (raw logits if fused)
#   target_ref : (1, TR, 128)    int8/i32 class index per element
#   out_ref    : (1, 1, 1, 128)  f32 per-lane partial sums (size_average=True)
#                (1, TR, 128)    f32 per-element loss       (size_average=False)
# ----------------------------------------------------------------------------
def _focal_loss_kernel(logit_ref, target_ref, out_ref, *, num_class, gamma,
                       low, high, add, alpha_per_class, alpha_scale,
                       fuse_softmax, reduce_mean, tr, s_valid, needs_mask):
    C = num_class
    tgt = target_ref[0].astype(jnp.int32)                    # (TR, 128)
    zero = jnp.zeros(tgt.shape, jnp.float32)

    sel = zero                                               # p[target]
    alpha_m = zero if alpha_per_class is not None else None

    if fuse_softmax:
        # Fused softmax over the class axis; probabilities sum to 1, so the
        # `low * sum_c p_c` smoothing term folds to `low` at compile time.
        m = logit_ref[0, 0].astype(jnp.float32)
        for c in range(1, C):
            m = jnp.maximum(m, logit_ref[0, c].astype(jnp.float32))
        tot = zero
        for c in range(C):
            e = jnp.exp(logit_ref[0, c].astype(jnp.float32) - m)
            tot = tot + e
            hit = tgt == c
            sel = sel + jnp.where(hit, e, zero)
            if alpha_per_class is not None:
                alpha_m = alpha_m + jnp.where(hit, alpha_per_class[c], 0.0)
        pt = low + (high - low) * (sel / tot) + add
    else:
        tot = zero if low != 0.0 else None
        for c in range(C):
            p_c = logit_ref[0, c].astype(jnp.float32)
            hit = tgt == c
            sel = sel + jnp.where(hit, p_c, zero)
            if low != 0.0:
                tot = tot + p_c
            if alpha_per_class is not None:
                alpha_m = alpha_m + jnp.where(hit, alpha_per_class[c], 0.0)
        if low != 0.0:
            pt = low * tot + (high - low) * sel + add
        else:
            pt = high * sel + add

    logpt = jnp.log(pt)
    omp = 1.0 - pt
    g = float(gamma)
    if g == 0.0:
        focal = jnp.ones_like(omp)
    elif g == float(int(g)) and 0 < g <= 8:        # integer gamma: multiplies
        focal = omp
        for _ in range(int(g) - 1):
            focal = focal * omp
    else:
        # Fractional gamma: pt may exceed 1.0 by a float ulp under label
        # smoothing; torch would produce NaN there, we clamp to 0 instead.
        focal = jnp.exp(g * jnp.log(jnp.maximum(omp, 0.0)))

    loss = focal * logpt
    if alpha_per_class is not None:
        loss = alpha_m * loss
    if float(alpha_scale) != 1.0:
        loss = jnp.float32(alpha_scale) * loss
    loss = -loss                                             # (TR, 128)

    if reduce_mean:
        if needs_mask:
            last = pl.num_programs(1) - 1
            r_id = pl.program_id(1)

            @pl.when(r_id == last)                 # only the tail strip masks
            def _():
                rows = jax.lax.broadcasted_iota(jnp.int32, (tr, LANES), 0)
                lanes = jax.lax.broadcasted_iota(jnp.int32, (tr, LANES), 1)
                elem = (r_id * tr + rows) * LANES + lanes
                keep = elem < s_valid
                out_ref[...] = jnp.sum(jnp.where(keep, loss, 0.0),
                                       axis=0).reshape(1, 1, 1, LANES)

            @pl.when(r_id != last)
            def _():
                out_ref[...] = jnp.sum(loss, axis=0).reshape(1, 1, 1, LANES)
        else:
            out_ref[...] = jnp.sum(loss, axis=0).reshape(1, 1, 1, LANES)
    else:
        out_ref[...] = loss.reshape(1, tr, LANES)   # OOB rows dropped by Pallas


# ----------------------------------------------------------------------------
# Wrapper: layout normalization, VMEM-aware tiling, pallas_call.
# ----------------------------------------------------------------------------
def _vmem_capacity_bytes():
    try:
        cap = int(getattr(pltpu.get_tpu_info(), "vmem_capacity_bytes", 0))
        if cap > 0:
            return cap
    except Exception:
        pass
    return 64 * 1024 * 1024          # conservative (v7x per-TensorCore VMEM)


def _round_up(x, m):
    return ((x + m - 1) // m) * m


def _focal_loss_pallas(logit, target, alpha_vec, *, gamma, smooth,
                       size_average, fuse_softmax=False):
    num_class = int(logit.shape[1])

    # --- layout normalization: (N, C, *spatial) -> (B, C, R, 128) -----------
    if logit.ndim > 2:
        B = int(logit.shape[0])
        S = int(np.prod(logit.shape[2:]))
        logit3 = logit.reshape(B, num_class, S)
        tgt = target
        if tgt.ndim == logit.ndim and tgt.shape[1] == 1:
            tgt = jnp.squeeze(tgt, axis=1)
        target2 = tgt.reshape(B, S)
    else:
        # TODO(synk): rare 2D (M, C) path still does a wrapper transpose
        # (one extra HBM pass); not the dense-prediction hot path.
        B = 1
        S = int(logit.shape[0])
        logit3 = jnp.transpose(logit, (1, 0)).reshape(1, num_class, S)
        target2 = target.reshape(1, S)

    Sp = _round_up(S, LANES)
    if Sp != S:
        # TODO(synk): fallback pad when the flattened spatial size is not a
        # multiple of 128 lanes (extra HBM pass); masked out in-kernel.
        logit3 = jnp.pad(logit3, ((0, 0), (0, 0), (0, Sp - S)))
        target2 = jnp.pad(target2, ((0, 0), (0, Sp - S)))
    R = Sp // LANES
    logit4 = logit3.reshape(B, num_class, R, LANES)

    # Compact targets: int8 cuts the target HBM stream 4x when C fits.
    use_i8 = (num_class <= 127) and (R >= 8)
    tgt_dtype = jnp.int8 if use_i8 else jnp.int32
    target3 = target2.reshape(B, R, LANES).astype(tgt_dtype)

    # --- generation-aware row-strip size (VMEM budget, not a fixed const) ---
    vmem_cap = _vmem_capacity_bytes()
    logit_bytes = jnp.dtype(logit.dtype).itemsize
    tgt_bytes = jnp.dtype(tgt_dtype).itemsize
    in_bytes_per_row = LANES * (num_class * logit_bytes + tgt_bytes)
    out_bytes_per_row = 0 if size_average else LANES * 4
    budget = int(vmem_cap * 0.35)        # for the double-buffered pipeline
    tr = budget // (2 * (in_bytes_per_row + out_bytes_per_row))
    tr = min(tr, R, 2048)
    if tr >= R:
        tr = R                           # full extent is always legal
    else:
        tr = max(8, (tr // 8) * 8)
    tr = min(tr, R)

    # v7x has two TensorCores: guarantee >= 2 grid steps when B == 1.
    if B == 1 and R > 8 and -(-R // tr) < 2:
        tr = max(8, _round_up(-(-R // 2), 8))

    nb = -(-R // tr)
    needs_mask = (nb * tr * LANES != S)

    # --- smoothing / alpha constants (baked into the kernel) ----------------
    if smooth:
        low = float(smooth) / (num_class - 1)
        high = 1.0 - float(smooth)
        add = float(smooth)
    else:
        low, high, add = 0.0, 1.0, 0.0

    alpha_np = np.asarray(alpha_vec, np.float32).reshape(-1)
    if bool(np.all(alpha_np == alpha_np[0])):
        alpha_per_class, alpha_scale = None, float(alpha_np[0])
    else:
        alpha_per_class, alpha_scale = tuple(float(a) for a in alpha_np), 1.0

    kernel = functools.partial(
        _focal_loss_kernel, num_class=num_class, gamma=float(gamma),
        low=low, high=high, add=add,
        alpha_per_class=alpha_per_class, alpha_scale=alpha_scale,
        fuse_softmax=bool(fuse_softmax), reduce_mean=bool(size_average),
        tr=tr, s_valid=S, needs_mask=needs_mask)

    in_specs = [
        pl.BlockSpec((1, num_class, tr, LANES), lambda b, r: (b, 0, r, 0)),
        pl.BlockSpec((1, tr, LANES), lambda b, r: (b, r, 0)),
    ]
    if size_average:
        out_shape = jax.ShapeDtypeStruct((B, nb, 1, LANES), jnp.float32)
        out_specs = pl.BlockSpec((1, 1, 1, LANES), lambda b, r: (b, r, 0, 0))
    else:
        out_shape = jax.ShapeDtypeStruct((B, R, LANES), jnp.float32)
        out_specs = pl.BlockSpec((1, tr, LANES), lambda b, r: (b, r, 0))

    out = pl.pallas_call(
        kernel,
        out_shape=out_shape,
        grid=(B, nb),
        in_specs=in_specs,
        out_specs=out_specs,
        compiler_params=pltpu.CompilerParams(
            dimension_semantics=("parallel", "parallel"),
            vmem_limit_bytes=int(vmem_cap * 0.75)),
    )(logit4, target3)

    if size_average:
        return jnp.sum(out) / jnp.float32(B * S)
    # unreduced: (B, R, 128) -> flat (B*S,) in (n, hw) order
    return out.reshape(B, Sp)[:, :S].reshape(-1)


# ----------------------------------------------------------------------------
# Module mirroring FocalLoss_gamma.forward.
#   apply_nonlin='softmax' (or jax.nn.softmax) fuses the class softmax into
#   the kernel; any other callable is applied wrapper-side.
# ----------------------------------------------------------------------------
class FocalLossGammaPallas:
    def __init__(self, apply_nonlin=None, alpha=None, gamma=2, balance_index=0,
                 smooth=1e-5, size_average=True):
        self.apply_nonlin = apply_nonlin
        self.alpha = alpha
        self.gamma = gamma
        self.balance_index = balance_index
        self.smooth = smooth
        self.size_average = size_average
        if self.smooth is not None:
            if self.smooth < 0 or self.smooth > 1.0:
                raise ValueError('smooth value should be in [0,1]')

    def _alpha_vector(self, num_class):
        alpha = self.alpha
        if alpha is None:
            a = np.ones((num_class,), np.float32)
        elif isinstance(alpha, (list, tuple, np.ndarray)):
            assert len(alpha) == num_class
            a = np.asarray(alpha, np.float32)
            a = a / a.sum()
        elif isinstance(alpha, float):
            a = np.full((num_class,), 1.0 - alpha, np.float32)
            a[self.balance_index] = alpha
        else:
            raise TypeError('Not support alpha type')
        return a

    def __call__(self, logit, target, gamma_=None):
        if gamma_ is not None:
            self.gamma = gamma_
        gamma = float(self.gamma)
        fuse_softmax = False
        x = logit
        if self.apply_nonlin is not None:
            if (self.apply_nonlin == 'softmax'
                    or self.apply_nonlin is jax.nn.softmax):
                fuse_softmax = True          # softmax over class axis, fused
            else:
                x = self.apply_nonlin(x)
        num_class = int(x.shape[1])
        alpha_vec = self._alpha_vector(num_class)
        smooth = float(self.smooth) if self.smooth is not None else 0.0
        return _focal_loss_pallas(x, target, alpha_vec, gamma=gamma,
                                  smooth=smooth,
                                  size_average=self.size_average,
                                  fuse_softmax=fuse_softmax)


# ----------------------------------------------------------------------------
# Pure-JAX reference mirroring the torch forward, for correctness checking.
# ----------------------------------------------------------------------------
def _focal_loss_ref(logit, target, alpha_vec, gamma, smooth, size_average=True):
    num_class = logit.shape[1]
    lg = logit.reshape(logit.shape[0], num_class, -1)
    lg = jnp.transpose(lg, (0, 2, 1)).reshape(-1, num_class)
    tgt = target
    if tgt.ndim == logit.ndim and tgt.shape[1] == 1:
        tgt = jnp.squeeze(tgt, 1)
    tgt = tgt.reshape(-1).astype(jnp.int32)
    one_hot = jax.nn.one_hot(tgt, num_class, dtype=jnp.float32)
    if smooth:
        one_hot = jnp.clip(one_hot, smooth / (num_class - 1), 1.0 - smooth)
    pt = jnp.sum(one_hot * lg, axis=1) + smooth
    logpt = jnp.log(pt)
    alpha_m = jnp.asarray(alpha_vec, jnp.float32)[tgt]
    loss = -alpha_m * jnp.power(1.0 - pt, gamma) * logpt
    return jnp.mean(loss) if size_average else loss


if __name__ == "__main__":
    key = jax.random.PRNGKey(0)
    k1, k2, k3, k4, k5, k6 = jax.random.split(key, 6)

    N, C, H, W = 2, 4, 16, 16
    raw = jax.random.normal(k1, (N, C, H, W), dtype=jnp.float32)
    probs = jax.nn.softmax(raw, axis=1)          # module expects probabilities
    target = jax.random.randint(k2, (N, 1, H, W), 0, C, dtype=jnp.int32)

    # 1) default config: alpha=None, gamma=2, smooth=1e-5, mean reduction
    mod = FocalLossGammaPallas()
    loss = jax.jit(mod.__call__)(probs, target)
    jax.block_until_ready(loss)
    ref = _focal_loss_ref(probs, target, np.ones((C,), np.float32), 2.0, 1e-5)
    assert np.allclose(np.asarray(loss), np.asarray(ref),
                       atol=1e-5, rtol=1e-5), (float(loss), float(ref))

    # 2) per-class alpha (exercises the baked non-uniform alpha path)
    alpha_list = [1.0, 2.0, 3.0, 4.0]
    mod2 = FocalLossGammaPallas(alpha=alpha_list)
    loss2 = jax.jit(mod2.__call__)(probs, target)
    jax.block_until_ready(loss2)
    a = np.asarray(alpha_list, np.float32)
    a = a / a.sum()
    ref2 = _focal_loss_ref(probs, target, a, 2.0, 1e-5)
    assert np.allclose(np.asarray(loss2), np.asarray(ref2),
                       atol=1e-5, rtol=1e-5), (float(loss2), float(ref2))

    # 3) unreduced per-element loss (size_average=False)
    mod3 = FocalLossGammaPallas(size_average=False)
    loss3 = jax.jit(mod3.__call__)(probs, target)
    jax.block_until_ready(loss3)
    ref3 = _focal_loss_ref(probs, target, np.ones((C,), np.float32), 2.0, 1e-5,
                           size_average=False)
    assert loss3.shape == ref3.shape
    assert np.allclose(np.asarray(loss3), np.asarray(ref3),
                       atol=1e-5, rtol=1e-5)

    # 4) fused softmax + int8 targets + float alpha + gamma=3 + B==1 split
    raw2 = jax.random.normal(k3, (1, 5, 64, 64), dtype=jnp.float32)
    tgt2 = jax.random.randint(k4, (1, 1, 64, 64), 0, 5, dtype=jnp.int32)
    mod4 = FocalLossGammaPallas(apply_nonlin='softmax', alpha=0.25,
                                gamma=3, balance_index=1)
    loss4 = jax.jit(mod4.__call__)(raw2, tgt2)
    jax.block_until_ready(loss4)
    a4 = np.full((5,), 0.75, np.float32)
    a4[1] = 0.25
    ref4 = _focal_loss_ref(jax.nn.softmax(raw2, axis=1), tgt2, a4, 3.0, 1e-5)
    assert np.allclose(np.asarray(loss4), np.asarray(ref4),
                       atol=5e-5, rtol=5e-5), (float(loss4), float(ref4))

    # 5) non-128-multiple spatial size (pad fallback + pl.when tail mask)
    raw3 = jax.random.normal(k5, (2, 3, 20, 20), dtype=jnp.float32)
    probs3 = jax.nn.softmax(raw3, axis=1)
    tgt3 = jax.random.randint(k6, (2, 1, 20, 20), 0, 3, dtype=jnp.int32)
    mod5 = FocalLossGammaPallas()
    loss5 = jax.jit(mod5.__call__)(probs3, tgt3)
    jax.block_until_ready(loss5)
    ref5 = _focal_loss_ref(probs3, tgt3, np.ones((3,), np.float32), 2.0, 1e-5)
    assert np.allclose(np.asarray(loss5), np.asarray(ref5),
                       atol=1e-5, rtol=1e-5), (float(loss5), float(ref5))

    print("KERNEL_OK")
</pallas_src>

<mosaic_0001>
module attributes {stable_mosaic.version = 11 : i64} {
  func.func @_focal_loss_kernel(%arg0: i32, %arg1: i32, %arg2: memref<1x4x2x128xf32, #tpu.memory_space<vmem>>, %arg3: memref<1x2x128xi32, #tpu.memory_space<vmem>>, %arg4: memref<1x1x1x128xf32, #tpu.memory_space<vmem>>) attributes {dimension_semantics = [#tpu.dimension_semantics<parallel>, #tpu.dimension_semantics<parallel>], iteration_bounds = array<i64: 2, 1>, scalar_prefetch = 0 : i64, scratch_operands = 0 : i64, tpu.core_type = #tpu.core_type<tc>, window_params = [{transform_indices = @transform_0, window_bounds = array<i64: 1, 4, 2, 128>}, {transform_indices = @transform_1, window_bounds = array<i64: 1, 2, 128>}, {transform_indices = @transform_2, window_bounds = array<i64: 1, 1, 1, 128>}]} {
    %c0 = arith.constant 0 : index
    %c0_0 = arith.constant 0 : index
    %c0_1 = arith.constant 0 : index
    %0 = vector.load %arg3[%c0, %c0_0, %c0_1] : memref<1x2x128xi32, #tpu.memory_space<vmem>>, vector<1x2x128xi32>
    %1 = vector.shape_cast %0 : vector<1x2x128xi32> to vector<2x128xi32>
    %cst = arith.constant 0.000000e+00 : f32
    %2 = vector.broadcast %cst : f32 to vector<2x128xf32>
    %c0_2 = arith.constant 0 : index
    %c0_3 = arith.constant 0 : index
    %c0_4 = arith.constant 0 : index
    %c0_5 = arith.constant 0 : index
    %3 = vector.load %arg2[%c0_2, %c0_3, %c0_4, %c0_5] : memref<1x4x2x128xf32, #tpu.memory_space<vmem>>, vector<1x1x2x128xf32>
    %4 = vector.shape_cast %3 : vector<1x1x2x128xf32> to vector<2x128xf32>
    %c0_i32 = arith.constant 0 : i32
    %5 = vector.broadcast %c0_i32 : i32 to vector<2x128xi32>
    %6 = arith.cmpi eq, %1, %5 : vector<2x128xi32>
    %7 = arith.select %6, %4, %2 : vector<2x128xi1>, vector<2x128xf32>
    %8 = arith.addf %2, %7 : vector<2x128xf32>
    %9 = arith.addf %2, %4 : vector<2x128xf32>
    %c0_6 = arith.constant 0 : index
    %c1 = arith.constant 1 : index
    %c0_7 = arith.constant 0 : index
    %c0_8 = arith.constant 0 : index
    %10 = vector.load %arg2[%c0_6, %c1, %c0_7, %c0_8] : memref<1x4x2x128xf32, #tpu.memory_space<vmem>>, vector<1x1x2x128xf32>
    %11 = vector.shape_cast %10 : vector<1x1x2x128xf32> to vector<2x128xf32>
    %c1_i32 = arith.constant 1 : i32
    %12 = vector.broadcast %c1_i32 : i32 to vector<2x128xi32>
    %13 = arith.cmpi eq, %1, %12 : vector<2x128xi32>
    %14 = arith.select %13, %11, %2 : vector<2x128xi1>, vector<2x128xf32>
    %15 = arith.addf %8, %14 : vector<2x128xf32>
    %16 = arith.addf %9, %11 : vector<2x128xf32>
    %c0_9 = arith.constant 0 : index
    %c2 = arith.constant 2 : index
    %c0_10 = arith.constant 0 : index
    %c0_11 = arith.constant 0 : index
    %17 = vector.load %arg2[%c0_9, %c2, %c0_10, %c0_11] : memref<1x4x2x128xf32, #tpu.memory_space<vmem>>, vector<1x1x2x128xf32>
    %18 = vector.shape_cast %17 : vector<1x1x2x128xf32> to vector<2x128xf32>
    %c2_i32 = arith.constant 2 : i32
    %19 = vector.broadcast %c2_i32 : i32 to vector<2x128xi32>
    %20 = arith.cmpi eq, %1, %19 : vector<2x128xi32>
    %21 = arith.select %20, %18, %2 : vector<2x128xi1>, vector<2x128xf32>
    %22 = arith.addf %15, %21 : vector<2x128xf32>
    %23 = arith.addf %16, %18 : vector<2x128xf32>
    %c0_12 = arith.constant 0 : index
    %c3 = arith.constant 3 : index
    %c0_13 = arith.constant 0 : index
    %c0_14 = arith.constant 0 : index
    %24 = vector.load %arg2[%c0_12, %c3, %c0_13, %c0_14] : memref<1x4x2x128xf32, #tpu.memory_space<vmem>>, vector<1x1x2x128xf32>
    %25 = vector.shape_cast %24 : vector<1x1x2x128xf32> to vector<2x128xf32>
    %c3_i32 = arith.constant 3 : i32
    %26 = vector.broadcast %c3_i32 : i32 to vector<2x128xi32>
    %27 = arith.cmpi eq, %1, %26 : vector<2x128xi32>
    %28 = arith.select %27, %25, %2 : vector<2x128xi1>, vector<2x128xf32>
    %29 = arith.addf %22, %28 : vector<2x128xf32>
    %30 = arith.addf %23, %25 : vector<2x128xf32>
    %cst_15 = arith.constant 3.33333332E-6 : f32
    %31 = vector.broadcast %cst_15 : f32 to vector<2x128xf32>
    %32 = arith.mulf %31, %30 : vector<2x128xf32>
    %cst_16 = arith.constant 0.999986648 : f32
    %33 = vector.broadcast %cst_16 : f32 to vector<2x128xf32>
    %34 = arith.mulf %33, %29 : vector<2x128xf32>
    %35 = arith.addf %32, %34 : vector<2x128xf32>
    %cst_17 = arith.constant 9.99999974E-6 : f32
    %36 = vector.broadcast %cst_17 : f32 to vector<2x128xf32>
    %37 = arith.addf %35, %36 : vector<2x128xf32>
    %38 = math.log %37 : vector<2x128xf32>
    %cst_18 = arith.constant 1.000000e+00 : f32
    %39 = vector.broadcast %cst_18 : f32 to vector<2x128xf32>
    %40 = arith.subf %39, %37 : vector<2x128xf32>
    %41 = arith.mulf %40, %40 : vector<2x128xf32>
    %42 = arith.mulf %41, %38 : vector<2x128xf32>
    %cst_19 = arith.constant 0.000000e+00 : f32
    %43 = vector.broadcast %cst_19 : f32 to vector<2x128xf32>
    %44 = arith.subf %43, %42 : vector<2x128xf32>
    %cst_20 = arith.constant dense<0.000000e+00> : vector<128xf32>
    %45 = vector.multi_reduction <add>, %44, %cst_20 [0] : vector<2x128xf32> to vector<128xf32>
    %46 = vector.shape_cast %45 : vector<128xf32> to vector<1x1x1x128xf32>
    %c0_21 = arith.constant 0 : index
    %c0_22 = arith.constant 0 : index
    %c0_23 = arith.constant 0 : index
    %c0_24 = arith.constant 0 : index
    %47 = vector.load %arg4[%c0_21, %c0_22, %c0_23, %c0_24] : memref<1x1x1x128xf32, #tpu.memory_space<vmem>>, vector<1x1x1x128xf32>
    tpu.vector_store %arg4[%c0_21, %c0_22, %c0_23, %c0_24], %46 {strides = array<i32>} : memref<1x1x1x128xf32, #tpu.memory_space<vmem>>, vector<1x1x1x128xf32>,
    return
  }
  func.func @transform_0(%arg0: i32, %arg1: i32) -> (i32, i32, i32, i32) {
    %c0_i32 = arith.constant 0 : i32
    %c0_i32_0 = arith.constant 0 : i32
    %c0_i32_1 = arith.constant 0 : i32
    return %arg0, %c0_i32, %arg1, %c0_i32_0 : i32, i32, i32, i32
  }
  func.func @transform_1(%arg0: i32, %arg1: i32) -> (i32, i32, i32) {
    %c0_i32 = arith.constant 0 : i32
    %c0_i32_0 = arith.constant 0 : i32
    return %arg0, %arg1, %c0_i32 : i32, i32, i32
  }
  func.func @transform_2(%arg0: i32, %arg1: i32) -> (i32, i32, i32, i32) {
    %c0_i32 = arith.constant 0 : i32
    %c0_i32_0 = arith.constant 0 : i32
    %c0_i32_1 = arith.constant 0 : i32
    return %arg0, %arg1, %c0_i32, %c0_i32_0 : i32, i32, i32, i32
  }
}

</mosaic_0001>

<bundles_post_ra>
// kernel: squeeze.1
= control target key start
LH: loop header
LB: loop body
LE: loop exit
PB: predicated region body
PF: predicated region fallthrough
CT: control target
= control target key end

     0   :  { %2 = vsyncpa [#allocation1], 0  ;;  %s123_s8 = smov [#allocation0]   ;;  %s150_s0 = inlined_call_operand.hbm [shape: s32[2,1,16,16], index: 0, kind: input, shape index: {}]   ;;  %s151_s1 = inlined_call_operand.vmem [shape: s32[2,2,128], index: 1, kind: output, shape index: {}]  }
   0x1   :  { %s6_s0 = sshll.u32 %s150_s0, 4  ;;  %s8_s9 = sshll.u32 %s123_s8, 4  ;;  %s7_s0 = int_to_ptr.hbm [resolvable:$true] %s6_s0  ;;  %s9_s9 = int_to_ptr.vmem [resolvable:$true] %s8_s9 }
   0x2   :  { %11 = dma.hbm_to_vmem [thread:$0]  %s7_s0, 512, %s9_s9, [#allocation1]  }
   0x3   :  { %121 = dma.done.wait [#allocation1], 512  }
   0x4   :  { %122 = vsyncadd [#allocation1], 4294966784  ;;  %v20_v0 = vld [vmem:[#allocation0 + $0x7] ss:$8 sm:$0xf]   ;;  %s124_s10 = smov 112  }
   0x5   :  { %v36_v1 = vld [vmem:[#allocation0 + $0x5] ss:$8 sm:$0xf]   ;;  %21 = vrot.lane.b32.xlu0 %v20_v0, %s124_s10  ;;  %s125_s11 = smov 80   ;;  %s126_s12 = smov 48   ;;  %vm15_vm0 = vcmask 130048  }
   0x6   :  { %37 = vrot.lane.b32.xlu1 %v36_v1, %s125_s11  ;;  %v52_v2 = vld [vmem:[#allocation0 + $0x3] ss:$8 sm:$0xf]   ;;  %v28_v3 = vld [vmem:[#allocation0 + $0x6] ss:$8 sm:$0xf]  }
   0x7   :  { %53 = vrot.lane.b32.xlu2 %v52_v2, %s126_s12  ;;  %v44_v4 = vld [vmem:[#allocation0 + $0x4] ss:$8 sm:$0xf]   ;;  %v60_v5 = vld [vmem:[#allocation0 + $0x2] ss:$8 sm:$0xf]  }
   0x8   :  { %s127_s13 = smov 96   ;;  %s128_s14 = smov 64   ;;  %v68_v6 = vld [vmem:[#allocation0 + $0x1] ss:$8 sm:$0xf]   ;;  %vm23_vm1 = vcmask 1048448  }
   0x9   :  { %s129_s15 = smov 32   ;;  %s130_s16 = smov 16   ;;  %v14_v7 = vld [vmem:[#allocation0] ss:$8 sm:$0xf]   ;;  %vm31_vm2 = vcmask 917248  }
   0xa   :  { %16 = vst.msk [vmem:[#allocation2] sm:$0x3] %vm15_vm0, %v14_v7   ;;  %vm39_vm3 = vcmask 786048   ;;  %vm47_vm4 = vcmask 654848   ;;  %vm55_vm5 = vcmask 523648   ;;  %vm63_vm6 = vcmask 392448  }
   0xb   :  { %18 = vst.msk [vmem:[#allocation2 + $0x6] sm:$0xc] %vm15_vm0, %v14_v7   ;;  %vm71_vm7 = vcmask 261248  }
   0xd   :  { %29 = vrot.lane.b32.xlu0 %v28_v3, %s127_s13 }
   0xe   :  { %45 = vrot.lane.b32.xlu1 %v44_v4, %s128_s14 }
   0xf   :  { %61 = vrot.lane.b32.xlu2 %v60_v5, %s129_s15 }
  0x15   :  { %69 = vrot.lane.b32.xlu0 %v68_v6, %s130_s16 }
  0x61   :  { %v54_v8 = vpop.permute.xlu2 %53  }
  0x69   :  { %v62_v9 = vpop.permute.xlu2 %61  }
  0x77   :  { %v22_v10 = vpop.permute.xlu0 %21  }
  0x78   :  { %v38_v11 = vpop.permute.xlu1 %37   ;;  %24 = vst.msk [vmem:[#allocation2] sm:$0x3] %vm23_vm1, %v22_v10  }
  0x79   :  { %26 = vst.msk [vmem:[#allocation2 + $0x6] sm:$0xc] %vm23_vm1, %v22_v10  }
  0x7f   :  { %v30_v12 = vpop.permute.xlu0 %29  }
  0x80   :  { %v46_v13 = vpop.permute.xlu1 %45   ;;  %32 = vst.msk [vmem:[#allocation2] sm:$0x3] %vm31_vm2, %v30_v12  }
  0x81   :  { %34 = vst.msk [vmem:[#allocation2 + $0x6] sm:$0xc] %vm31_vm2, %v30_v12  }
  0x82   :  { %40 = vst.msk [vmem:[#allocation2] sm:$0x3] %vm39_vm3, %v38_v11  }
  0x83   :  { %42 = vst.msk [vmem:[#allocation2 + $0x6] sm:$0xc] %vm39_vm3, %v38_v11  }
  0x84   :  { %48 = vst.msk [vmem:[#allocation2] sm:$0x3] %vm47_vm4, %v46_v13  }
  0x85   :  { %50 = vst.msk [vmem:[#allocation2 + $0x6] sm:$0xc] %vm47_vm4, %v46_v13  }
  0x86   :  { %56 = vst.msk [vmem:[#allocation2] sm:$0x3] %vm55_vm5, %v54_v8  }
  0x87   :  { %58 = vst.msk [vmem:[#allocation2 + $0x6] sm:$0xc] %vm55_vm5, %v54_v8   ;;  %v70_v14 = vpop.permute.xlu0 %69  }
  0x88   :  { %64 = vst.msk [vmem:[#allocation2] sm:$0x3] %vm63_vm6, %v62_v9  }
  0x89   :  { %66 = vst.msk [vmem:[#allocation2 + $0x6] sm:$0xc] %vm63_vm6, %v62_v9  }
  0x8a   :  { %72 = vst.msk [vmem:[#allocation2] sm:$0x3] %vm71_vm7, %v70_v14  }
  0x8b   :  { %74 = vst.msk [vmem:[#allocation2 + $0x6] sm:$0xc] %vm71_vm7, %v70_v14  }
  0x91   :  { %v77_v15 = vld [vmem:[#allocation2] sm:$0x3] }
  0x92   :  { %80 = vst [vmem:[%s151_s1] sm:$0x3] %v77_v15  ;;  %v82_v16 = vld [vmem:[#allocation2 + $0x8] sm:$0x3] }
  0x93   :  { %88 = vst [vmem:[%s151_s1 + $0x2] sm:$0x3] %v82_v16 }
  0x94   :  { %87 = vsyncpa [#allocation1], 1 }

// kernel: a_call__.1
= control target key start
LH: loop header
LB: loop body
LE: loop exit
PB: predicated region body
PF: predicated region fallthrough
CT: control target
= control target key end

     0   :  { %s407_s9 = smov 0   ;;  %s409_s10 = smov 0   ;;  %s448_s0 = inlined_call_operand.vmem [shape: f32[2,4,2,128], index: 0, kind: input, shape index: {}]   ;;  %s449_s1 = inlined_call_operand.vmem [shape: s32[2,2,128], index: 1, kind: input, shape index: {}]   ;;  %s450_s2 = inlined_call_operand.vmem [shape: f32[2,1,1,128], index: 2, kind: output, shape index: {}]  }
   0x1   :  { %s411_s11 = smov 0  }
   0x2 LB: > { %s24_s12 = sadd.s32 1, %s386_s10  ;;  %p332_p0 = scmp.ge.s32.totalorder %s390_s11, 1  ;;  %s390_s11 = sphi %s411_s11, %s12_s11   ;;  %s386_s10 = sphi %s409_s10, %s452_s10   ;;  %s382_s9 = sphi %s407_s9, %s451_s9  }
   0x3   : > { %p26_p1 = scmp.ge.s32.totalorder %s24_s12, 2  ;;  %p145_p2 = scmp.lt.s32.totalorder %s390_s11, 3 }
   0x5   : > { %s454_s12 = smov (%p26_p1, %s24_s12), 0  ;;  %p146_p3 = pnand %p332_p0, %p145_p2 }
   0x6   : > { %p178_p4 = scmp.lt.s32.totalorder (!%p146_p3), %s382_s9, 1 }
   0x7   : > { %149 = sbr.rel (%p146_p3) target bundleno = 57 (0x39), region = 28 }
   0xc   : > { %s456_s9 = smov (!%p178_p4, %s382_s9), 1  ;;  %vm233_vm4 = vcmask 1041408  }
   0xd   : > { %s341_s13 = sshll.u32 %s456_s9, 3  ;;  %s335_s14 = sshll.u32 %s456_s9, 1 }
   0xe   : > { %s185_s17 = scalar_lea.vmem %s448_s0, %s341_s13  ;;  %s192_s20 = scalar_lea.vmem %s449_s1, %s335_s14 }
   0xf   : > { %v199_v0 = vld [vmem:[%s192_s20] sm:$0x3]  ;;  %v336_v2 = vld [vmem:[%s185_s17 + $0x2] sm:$0x3]  ;;  %v337_v4 = vld [vmem:[%s185_s17 + $0x4] sm:$0x3]  ;;  %s198_s23 = scalar_lea.vmem %s450_s2, %s456_s9 }
  0x10   : > { %v200_v1 = vld [vmem:[%s185_s17] sm:$0x3]  ;;  %vm201_vm0 = vcmp.eq.s32.totalorder %v199_v0, 0  ;;  %vm207_vm1 = vcmp.eq.s32.totalorder %v199_v0, 1  ;;  %vm213_vm2 = vcmp.eq.s32.totalorder %v199_v0, 2  ;;  %vm219_vm3 = vcmp.eq.s32.totalorder %v199_v0, 3 }
  0x11   : > { %v210_v3 = vadd.f32 %v336_v2, %v200_v1  ;;  %v202_v5 = vsel %vm201_vm0, %v200_v1, 0.0  ;;  %v208_v6 = vsel %vm207_vm1, %v336_v2, 0.0  ;;  %v214_v7 = vsel %vm213_vm2, %v337_v4, 0.0  ;;  %v338_v8 = vld [vmem:[%s185_s17 + $0x6] sm:$0x3] }
  0x12   : > { %v209_v9 = vadd.f32 %v208_v6, %v202_v5  ;;  %v220_v11 = vsel %vm219_vm3, %v338_v8, 0.0 }
  0x13   : > { %v216_v10 = vadd.f32 %v337_v4, %v210_v3 }
  0x14   : > { %v215_v12 = vadd.f32 %v214_v7, %v209_v9 }
  0x15   : > { %v222_v13 = vadd.f32 %v338_v8, %v216_v10 }
  0x16   : > { %v221_v14 = vadd.f32 %v220_v11, %v215_v12 }
  0x17   : > { %v223_v15 = vmul.f32 3.3333333e-06, %v222_v13 }
  0x18   : > { %v224_v16 = vmul.f32 0.99998665, %v221_v14 }
  0x1a   : > { %v225_v17 = vadd.f32 %v224_v16, %v223_v15 }
  0x1c   : > { %v226_v18 = vadd.f32 1e-05, %v225_v17 }
  0x1e   : > { %366 = vlog2.f32 %v226_v18  ;;  %v229_v19 = vsub.f32 1.0, %v226_v18 }
  0x20   : > { %v230_v20 = vmul.f32 %v229_v19, %v229_v19 }
  0x24   : > { %v367_v21 = vpop.eup %366 }
  0x25   : > { %v228_v22 = vmul.f32 0.6931472, %v367_v21 }
  0x27   : > { %v231_v23 = vmul.f32 %v230_v20, %v228_v22 }
  0x29   : > { %v232_v24 = vsub.f32 0.0, %v231_v23 }
  0x2b   : > { %v234_v25 = vsel %vm233_vm4, %v232_v24, 0.0 }
  0x2c   : > { %v235_v26 = vrot.slane %v234_v25, 4 }
  0x2e   : > { %v236_v27 = vadd.f32 %v235_v26, %v234_v25 }
  0x30   : > { %v237_v28 = vrot.slane %v236_v27, 2 }
  0x32   : > { %v238_v29 = vadd.f32 %v237_v28, %v236_v27 }
  0x34   : > { %v239_v30 = vrot.slane %v238_v29, 1 }
  0x36   : > { %v240_v31 = vadd.f32 %v239_v30, %v238_v29 }
  0x38   : > { %241 = vst [vmem:[%s198_s23] sm:$0x1] %v240_v31 }
  0x39 PF: > { %s12_s11 = sadd.s32 1, %s390_s11   ;;  %s451_s9 = smov %s386_s10 }
  0x3a   : > { %p9_p5 = scmp.ge.s32.totalorder %s12_s11, 4   ;;  %s452_s10 = smov %s454_s12 }
  0x3c   :  { %11 = sbr.rel (!%p9_p5) target bundleno = 2 (0x2), region = 64 }

</bundles_post_ra>
